<compile_context>
chip_gen: v7x
topology: tpu7x:2x2x1
jax: 0.10.0
libtpu: 0.0.40
codegen_flags: <defaults>
</compile_context>

<pallas_src>
import jax
import jax.numpy as jnp
from jax.experimental import pallas as pl
from jax.experimental.pallas import tpu as pltpu


# ----------------------------------------------------------------------------
# Host-side packing helpers (pure data layout, no compute-semantics change)
# ----------------------------------------------------------------------------
def _round_up(x: int, m: int) -> int:
    return ((x + m - 1) // m) * m


def _fuse_heads(policy_params, value_params):
    """Fuse policy/value MLPs into one stack: concat layer 0, block-diag after."""
    # TODO(synk): unequal-depth heads would need a non-fused fallback path.
    assert len(policy_params) == len(value_params), (
        "fused-head kernel requires equal depth policy/value heads")
    fused = []
    for i, ((wp, bp), (wv, bv)) in enumerate(zip(policy_params, value_params)):
        if i == 0:
            w = jnp.concatenate([wp, wv], axis=1)
        else:
            top = jnp.concatenate(
                [wp, jnp.zeros((wp.shape[0], wv.shape[1]), wp.dtype)], axis=1)
            bot = jnp.concatenate(
                [jnp.zeros((wv.shape[0], wp.shape[1]), wv.dtype), wv], axis=1)
            w = jnp.concatenate([top, bot], axis=0)
        b = jnp.concatenate([bp, bv], axis=0)
        fused.append((w, b))
    return fused


def _fold_spatial_mean(fused, spatial: int):
    """Fold the (H*W) spatial mean into the layer-0 weight.

    mean over s of x[n, c, s] @ W0  ==  x.reshape(N, C*S) @ repeat(W0/S, S, 0)
    (row-major reshape: flat index = c*S + s, matching jnp.repeat along axis 0).
    """
    (w0, b0), rest = fused[0], fused[1:]
    w0 = jnp.repeat(w0, spatial, axis=0) / float(spatial)
    return [(w0, b0)] + rest


def _pack_slabs(fused):
    """Stack fused layers into one weight slab (rows, K) and one bias slab (L, K).

    All out-dims are zero-padded to K (multiple of 128) so every layer output is
    lane-dense; zero pad rows/cols + ReLU(0)=0 keep the math exact.
    Returns (w_slab, b_slab, row_segs, K) where row_segs[i] = (row_lo, in_rows).
    """
    K = max(_round_up(w.shape[1], 128) for w, _ in fused)
    w_rows, b_rows, row_segs = [], [], []
    row_lo = 0
    for i, (w, b) in enumerate(fused):
        in_dim, out_dim = w.shape
        if i == 0:
            seg_rows = _round_up(in_dim, 8)          # keep next segment 8-aligned
            w = jnp.pad(w, ((0, seg_rows - in_dim), (0, K - out_dim)))
            row_segs.append((row_lo, in_dim))        # slice exact in_dim rows
        else:
            seg_rows = K                              # prev activation is K wide
            w = jnp.pad(w, ((0, K - in_dim), (0, K - out_dim)))
            row_segs.append((row_lo, K))
        b = jnp.pad(b, (0, K - out_dim))
        w_rows.append(w)
        b_rows.append(b[None, :])
        row_lo += seg_rows
    w_slab = jnp.concatenate(w_rows, axis=0)          # (total_rows, K)
    b_slab = jnp.concatenate(b_rows, axis=0)          # (L, K)
    return w_slab, b_slab, row_segs, K


# ----------------------------------------------------------------------------
# Kernel
# ----------------------------------------------------------------------------
def _make_prediction_kernel(row_segs):
    """row_segs: static list of (row_lo, in_rows) per fused layer."""
    n_layers = len(row_segs)

    def kernel(x_ref, w_ref, b_ref, out_ref):
        # x_ref: (bn, C*H*W) lane-dense — spatial mean already folded into W0.
        a = x_ref[...]
        for li, (lo, rows) in enumerate(row_segs):
            w = w_ref[lo:lo + rows, :]                # static, 8-aligned slice
            a = jnp.dot(a, w, preferred_element_type=jnp.float32) + b_ref[li:li + 1, :]
            if li < n_layers - 1:
                a = jnp.maximum(a, 0.0)
        out_ref[...] = a.astype(out_ref.dtype)        # single lane-dense (bn, K) store

    return kernel


# ----------------------------------------------------------------------------
# Wrapper
# ----------------------------------------------------------------------------
def prediction_network_forward(x_nchw, policy_params, value_params,
                               action_space_size, support_size):
    """PredictionNetwork forward via one fused Pallas kernel.

    x_nchw:        (N, C, H, W) float32
    policy_params: list of (W, b) with W: (in, out), b: (out,)
    value_params:  list of (W, b) likewise
    Returns (policy_logits (N, A), value (N, 2*support_size+1))
    """
    N, C, H, W = x_nchw.shape
    S = H * W
    F = C * S
    value_size = 2 * support_size + 1

    x_flat = x_nchw.reshape(N, F)                     # lane-dense flat features

    fused = _fold_spatial_mean(_fuse_heads(policy_params, value_params), S)
    w_slab, b_slab, row_segs, K = _pack_slabs(fused)

    # Batch tiling: full batch per block for small N, 256-row blocks otherwise.
    bn = N if N <= 256 else 256
    grid = (pl.cdiv(N, bn),)

    kernel = _make_prediction_kernel(row_segs)

    flops = 2 * N * sum(rows * K for _, rows in row_segs)
    bytes_accessed = 4 * (x_flat.size + w_slab.size + b_slab.size + N * K)
    cost = pl.CostEstimate(flops=flops, transcendentals=0,
                           bytes_accessed=bytes_accessed)

    out_packed = pl.pallas_call(
        kernel,
        out_shape=jax.ShapeDtypeStruct((N, K), jnp.float32),
        grid_spec=pltpu.PrefetchScalarGridSpec(
            num_scalar_prefetch=0,
            grid=grid,
            in_specs=[
                pl.BlockSpec((bn, F), lambda i: (i, 0)),
                pl.BlockSpec(w_slab.shape, lambda i: (0, 0)),   # resident weights
                pl.BlockSpec(b_slab.shape, lambda i: (0, 0)),   # resident biases
            ],
            out_specs=pl.BlockSpec((bn, K), lambda i: (i, 0)),
        ),
        compiler_params=pltpu.CompilerParams(
            dimension_semantics=("parallel",)),
        cost_estimate=cost,
    )(x_flat, w_slab, b_slab)

    policy_logits = out_packed[:, :action_space_size]
    value = out_packed[:, action_space_size:action_space_size + value_size]
    return policy_logits, value


# ----------------------------------------------------------------------------
# Deterministic parameter construction (synthetic init, no checkpoint)
# ----------------------------------------------------------------------------
def _init_mlp_params(key, in_dim, hidden_layers, out_dim):
    """Build (W, b) pairs; W stored as (in, out) for the kernel."""
    dims = [in_dim] + list(hidden_layers) + [out_dim]
    params = []
    for i in range(len(dims) - 1):
        key, wk, bk = jax.random.split(key, 3)
        fan_in = dims[i]
        bound = 1.0 / jnp.sqrt(fan_in)
        w = jax.random.uniform(wk, (dims[i], dims[i + 1]),
                               minval=-bound, maxval=bound, dtype=jnp.float32)
        b = jax.random.uniform(bk, (dims[i + 1],),
                               minval=-bound, maxval=bound, dtype=jnp.float32)
        params.append((w, b))
    return key, params


def _reference_forward(x_nchw, policy_params, value_params):
    """Pure-JAX reference matching the PyTorch forward semantics."""
    h = jnp.mean(x_nchw, axis=(2, 3))
    p = h
    for i, (w, b) in enumerate(policy_params):
        p = p @ w + b
        if i < len(policy_params) - 1:
            p = jnp.maximum(p, 0.0)
    v = h
    for i, (w, b) in enumerate(value_params):
        v = v @ w + b
        if i < len(value_params) - 1:
            v = jnp.maximum(v, 0.0)
    return p, v


if __name__ == "__main__":
    # Module config (small, consistent with the PyTorch __init__ signature)
    num_channels = 32
    action_space_size = 8
    fc_policy_layers = [32]
    fc_value_layers = [32]
    support_size = 10           # value head output dim = 2*10 + 1 = 21
    N, H, W = 2, 8, 8

    key = jax.random.PRNGKey(0)
    key, xk = jax.random.split(key)
    x = jax.random.normal(xk, (N, num_channels, H, W), dtype=jnp.float32)

    key, policy_params = _init_mlp_params(
        key, num_channels, fc_policy_layers, action_space_size)
    key, value_params = _init_mlp_params(
        key, num_channels, fc_value_layers, 2 * support_size + 1)

    policy_logits, value = prediction_network_forward(
        x, policy_params, value_params, action_space_size, support_size)
    policy_logits = jax.block_until_ready(policy_logits)
    value = jax.block_until_ready(value)

    # Correctness check against pure-JAX reference of the PyTorch forward.
    # (tolerance allows the reassociation from folding the spatial mean into W0)
    p_ref, v_ref = _reference_forward(x, policy_params, value_params)
    assert policy_logits.shape == (N, action_space_size)
    assert value.shape == (N, 2 * support_size + 1)
    assert jnp.allclose(policy_logits, p_ref, atol=1e-4, rtol=1e-4)
    assert jnp.allclose(value, v_ref, atol=1e-4, rtol=1e-4)

    print("KERNEL_OK")
</pallas_src>

<mosaic_0001>
module attributes {stable_mosaic.version = 11 : i64} {
  func.func @kernel(%arg0: i32, %arg1: memref<2x2048xf32, #tpu.memory_space<vmem>>, %arg2: memref<2176x128xf32, #tpu.memory_space<vmem>>, %arg3: memref<2x128xf32, #tpu.memory_space<vmem>>, %arg4: memref<2x128xf32, #tpu.memory_space<vmem>>) attributes {dimension_semantics = [#tpu.dimension_semantics<parallel>], iteration_bounds = array<i64: 1>, scalar_prefetch = 0 : i64, scratch_operands = 0 : i64, tpu.core_type = #tpu.core_type<tc>, window_params = [{transform_indices = @transform_0, window_bounds = array<i64: 2, 2048>}, {pipeline_mode = #tpu.pipeline_mode<synchronous>, transform_indices = @transform_1, window_bounds = array<i64: 2176, 128>}, {pipeline_mode = #tpu.pipeline_mode<synchronous>, transform_indices = @transform_2, window_bounds = array<i64: 2, 128>}, {transform_indices = @transform_3, window_bounds = array<i64: 2, 128>}]} {
    %c0 = arith.constant 0 : index
    %c0_0 = arith.constant 0 : index
    %0 = vector.load %arg1[%c0, %c0_0] : memref<2x2048xf32, #tpu.memory_space<vmem>>, vector<2x2048xf32>
    %c0_1 = arith.constant 0 : index
    %c0_2 = arith.constant 0 : index
    %1 = vector.load %arg2[%c0_1, %c0_2] : memref<2176x128xf32, #tpu.memory_space<vmem>>, vector<2048x128xf32>
    %cst = arith.constant dense<0.000000e+00> : vector<2x128xf32>
    %2 = tpu.matmul %0, %1, %cst {dimension_numbers = #tpu.dot_dimension_numbers<[1], [0], [0], [1], [0, 0, 1, 1], [], []>} : vector<2x2048xf32>, vector<2048x128xf32>, vector<2x128xf32> -> vector<2x128xf32>
    %c0_3 = arith.constant 0 : index
    %c0_4 = arith.constant 0 : index
    %3 = vector.load %arg3[%c0_3, %c0_4] : memref<2x128xf32, #tpu.memory_space<vmem>>, vector<1x128xf32>
    %4 = vector.broadcast %3 : vector<1x128xf32> to vector<2x128xf32>
    %5 = arith.addf %2, %4 : vector<2x128xf32>
    %cst_5 = arith.constant 0.000000e+00 : f32
    %6 = vector.broadcast %cst_5 : f32 to vector<2x128xf32>
    %7 = arith.maximumf %5, %6 : vector<2x128xf32>
    %c2048 = arith.constant 2048 : index
    %c0_6 = arith.constant 0 : index
    %8 = vector.load %arg2[%c2048, %c0_6] : memref<2176x128xf32, #tpu.memory_space<vmem>>, vector<128x128xf32>
    %cst_7 = arith.constant dense<0.000000e+00> : vector<2x128xf32>
    %9 = tpu.matmul %7, %8, %cst_7 {dimension_numbers = #tpu.dot_dimension_numbers<[1], [0], [0], [1], [0, 0, 1, 1], [], []>} : vector<2x128xf32>, vector<128x128xf32>, vector<2x128xf32> -> vector<2x128xf32>
    %c1 = arith.constant 1 : index
    %c0_8 = arith.constant 0 : index
    %10 = vector.load %arg3[%c1, %c0_8] : memref<2x128xf32, #tpu.memory_space<vmem>>, vector<1x128xf32>
    %11 = vector.broadcast %10 : vector<1x128xf32> to vector<2x128xf32>
    %12 = arith.addf %9, %11 : vector<2x128xf32>
    %c0_9 = arith.constant 0 : index
    %c0_10 = arith.constant 0 : index
    %13 = vector.load %arg4[%c0_9, %c0_10] : memref<2x128xf32, #tpu.memory_space<vmem>>, vector<2x128xf32>
    tpu.vector_store %arg4[%c0_9, %c0_10], %12 {strides = array<i32>} : memref<2x128xf32, #tpu.memory_space<vmem>>, vector<2x128xf32>,
    return
  }
  func.func @transform_0(%arg0: i32) -> (i32, i32) {
    %c0_i32 = arith.constant 0 : i32
    %c0_i32_0 = arith.constant 0 : i32
    return %arg0, %c0_i32 : i32, i32
  }
  func.func @transform_1(%arg0: i32) -> (i32, i32) {
    %c0_i32 = arith.constant 0 : i32
    %c0_i32_0 = arith.constant 0 : i32
    %c0_i32_1 = arith.constant 0 : i32
    return %c0_i32, %c0_i32_0 : i32, i32
  }
  func.func @transform_2(%arg0: i32) -> (i32, i32) {
    %c0_i32 = arith.constant 0 : i32
    %c0_i32_0 = arith.constant 0 : i32
    %c0_i32_1 = arith.constant 0 : i32
    return %c0_i32, %c0_i32_0 : i32, i32
  }
  func.func @transform_3(%arg0: i32) -> (i32, i32) {
    %c0_i32 = arith.constant 0 : i32
    %c0_i32_0 = arith.constant 0 : i32
    return %arg0, %c0_i32 : i32, i32
  }
}

</mosaic_0001>

<bundles_post_ra>
// kernel: tpu_custom_call.1
= control target key start
LH: loop header
LB: loop body
LE: loop exit
PB: predicated region body
PF: predicated region fallthrough
CT: control target
= control target key end

     0   :  { %8 = vsyncpa [#allocation3], 0  ;;  %s1914_s0 = inlined_call_operand.hbm [shape: f32[2,2048], index: 0, kind: input, shape index: {}]   ;;  %s1915_s1 = inlined_call_operand.hbm [shape: f32[2176,128], index: 1, kind: input, shape index: {}]   ;;  %s1916_s2 = inlined_call_operand.hbm [shape: f32[2,128], index: 2, kind: input, shape index: {}]   ;;  %s1917_s3 = inlined_call_operand.hbm [shape: f32[2,128], index: 3, kind: output, shape index: {}]  }
   0x1   :  { %9 = vsyncpa [#allocation6], 0 }
   0x2   :  { %10 = vsyncpa [#allocation4], 0  ;;  %s1796_s12 = smov [#allocation5]   ;;  %s1702_s16 = scalar_lea.hbm %s1915_s1, 34816 }
   0x3   :  { %s26_s13 = sshll.u32 %s1796_s12, 4  ;;  %p1703_p0 = scmp.ne.s32.totalorder %s1915_s1, %s1702_s16  ;;  %s27_s13 = int_to_ptr.vmem [resolvable:$true] %s26_s13 }
   0x4   :  { %p1706_p1 = scmp.lt.u32.totalorder %s1702_s16, %s1915_s1 }
   0x6   :  { %p1708_p2 = pnand %p1706_p1, %p1703_p0 }
   0x8   :  { %1711 = shalt.err (!%p1708_p2)
}
   0x9   :  { %s1712_s21 = scalar_lea.vmem %s27_s13, 34816  ;;  %p1717_p4 = scmp.lt.s32.totalorder %s27_s13, %s27_s13 }
   0xa   :  { %p1713_p3 = scmp.ne.s32.totalorder %s27_s13, %s1712_s21  ;;  %p1718_p5 = scmp.lt.s32.totalorder %s1712_s21, %s1712_s21 }
   0xc   :  { %p1719_p6 = por %p1718_p5, %p1717_p4 }
   0xe   :  { %p1720_p7 = pnand %p1719_p6, %p1713_p3 }
  0x10   :  { %1723 = shalt.err (!%p1720_p7)
}
  0x11   :  { %s1797_s22 = smov 128   ;;  %s1798_s23 = smov 8  }
  0x12   :  { %32 = dma.hbm_to_vmem [thread:$0]  %s1915_s1, 34816, %s27_s13, [#allocation6], %s1797_s22, %s1797_s22, %s1798_s23  }
  0x13   :  { %s1799_s26 = smov [#allocation2]   ;;  %s1800_s28 = smov [#allocation7]  }
  0x14   :  { %s17_s27 = sshll.u32 %s1799_s26, 4  ;;  %s39_s29 = sshll.u32 %s1800_s28, 4  ;;  %s18_s27 = int_to_ptr.vmem [resolvable:$true] %s17_s27  ;;  %s40_s29 = int_to_ptr.vmem [resolvable:$true] %s39_s29 }
  0x15   :  { %s1724_s5 = scalar_lea.hbm %s1914_s0, 512 }
  0x16   :  { %p1725_p8 = scmp.ne.s32.totalorder %s1914_s0, %s1724_s5  ;;  %p1728_p9 = scmp.lt.u32.totalorder %s1724_s5, %s1914_s0 }
  0x18   :  { %p1730_p10 = pnand %p1728_p9, %p1725_p8 }
  0x1a   :  { %1733 = shalt.err (!%p1730_p10)
}
  0x1b   :  { %s1734_s1 = scalar_lea.vmem %s18_s27, 512  ;;  %p1739_p12 = scmp.lt.s32.totalorder %s18_s27, %s18_s27 }
  0x1c   :  { %p1735_p11 = scmp.ne.s32.totalorder %s18_s27, %s1734_s1  ;;  %p1740_p13 = scmp.lt.s32.totalorder %s1734_s1, %s1734_s1 }
  0x1e   :  { %p1741_p0 = por %p1740_p13, %p1739_p12 }
  0x20   :  { %p1742_p1 = pnand %p1741_p0, %p1735_p11 }
  0x22   :  { %1745 = shalt.err (!%p1742_p1)
}
  0x23   :  { %20 = dma.hbm_to_vmem [thread:$0]  %s1914_s0, 512, %s18_s27, [#allocation3]  }
  0x24   :  { %s1746_s14 = scalar_lea.hbm %s1916_s2, 32 }
  0x25   :  { %p1747_p2 = scmp.ne.s32.totalorder %s1916_s2, %s1746_s14  ;;  %p1750_p3 = scmp.lt.u32.totalorder %s1746_s14, %s1916_s2 }
  0x27   :  { %p1752_p4 = pnand %p1750_p3, %p1747_p2 }
  0x29   :  { %1755 = shalt.err (!%p1752_p4)
}
  0x2a   :  { %s1756_s19 = scalar_lea.vmem %s40_s29, 32  ;;  %p1761_p6 = scmp.lt.s32.totalorder %s40_s29, %s40_s29 }
  0x2b   :  { %p1757_p5 = scmp.ne.s32.totalorder %s40_s29, %s1756_s19  ;;  %p1762_p7 = scmp.lt.s32.totalorder %s1756_s19, %s1756_s19 }
  0x2d   :  { %p1763_p8 = por %p1762_p7, %p1761_p6 }
  0x2f   :  { %p1764_p9 = pnand %p1763_p8, %p1757_p5 }
  0x31   :  { %1767 = shalt.err (!%p1764_p9)
}
  0x32   :  { %42 = dma.hbm_to_vmem [thread:$0]  %s1916_s2, 32, %s40_s29, [#allocation6]  }
  0x33   :  { %1790 = dma.done.wait [#allocation3], 512  }
  0x34   :  { %1791 = vsyncadd [#allocation3], 4294966784 }
  0x35   :  { %1792 = dma.done.wait [#allocation6], 34848  }
  0x36   :  { %1793 = vsyncadd [#allocation6], 4294932448  ;;  %v72_v0 = vld [vmem:[#allocation5 + $0x80] sm:$0xff]  ;;  %v73_v1 = vld [vmem:[#allocation5 + $0x88] sm:$0xff]  ;;  %v1801_v47 = vmov 1983009808   ;;  %v325_v49 = vlaneseq }
  0x37   :  { %v56_v2 = vld [vmem:[#allocation5] sm:$0xff]  ;;  %v1408_v3 = vpack.c.bf16 %v73_v1, %v72_v0  ;;  %v57_v4 = vld [vmem:[#allocation5 + $0x8] sm:$0xff]  ;;  %v74_v11 = vld [vmem:[#allocation5 + $0x90] sm:$0xff]  ;;  %v323_v48 = vunpack.c.l.s4 %v1801_v47  ;;  %vm1803_vm0 = vmmov 0   ;;  %s1805_s2 = smov [#allocation8]  }
  0x38   :  { %v104_v5 = vld [vmem:[#allocation5 + $0x180] sm:$0xff]  ;;  %v105_v6 = vld [vmem:[#allocation5 + $0x188] sm:$0xff]  ;;  %v1410_v7 = vpack.c.bf16 %v57_v4, %v56_v2  ;;  %v75_v13 = vld [vmem:[#allocation5 + $0x98] sm:$0xff]  ;;  %v326_v0 = vshrl.u32 %v325_v49, 7  ;;  %s1064_s21 = sshll.u32 %s1805_s2, 4  ;;  %s1065_s21 = int_to_ptr.vmem [resolvable:$true] %s1064_s21 }
  0x39   :  { %v1440_v8 = vpack.c.bf16 %v105_v6, %v104_v5  ;;  %v88_v9 = vld [vmem:[#allocation5 + $0x100] sm:$0xff]  ;;  %v89_v10 = vld [vmem:[#allocation5 + $0x108] sm:$0xff]  ;;  %1409 = vmatprep.subr.bf16.mxu0 %v1408_v3  ;;  %v58_v14 = vld [vmem:[#allocation5 + $0x10] sm:$0xff]  ;;  %v1412_v16 = vpack.c.bf16 %v75_v13, %v74_v11  ;;  %v324_v63 = vunpack.c.0.s8 %v323_v48  ;;  %s1768_s22 = scalar_lea.vmem %s1065_s21, 32  ;;  %p1773_p11 = scmp.lt.s32.totalorder %s1065_s21, %s1065_s21 }
  0x3a   :  { %v1442_v12 = vpack.c.bf16 %v89_v10, %v88_v9  ;;  %v59_v15 = vld [vmem:[#allocation5 + $0x18] sm:$0xff]  ;;  %1411 = vmatpush3.bf16.msra.mxu0 %v1410_v7  ;;  %v106_v18 = vld [vmem:[#allocation5 + $0x190] sm:$0xff]  ;;  %v76_v23 = vld [vmem:[#allocation5 + $0xa0] sm:$0xff]  ;;  %p1769_p10 = scmp.ne.s32.totalorder %s1065_s21, %s1768_s22  ;;  %p1774_p12 = scmp.lt.s32.totalorder %s1768_s22, %s1768_s22 }
  0x3b   :  { %1441 = vmatprep.subr.bf16.mxu1 %v1440_v8  ;;  %v1414_v17 = vpack.c.bf16 %v59_v15, %v58_v14  ;;  %v107_v19 = vld [vmem:[#allocation5 + $0x198] sm:$0xff]  ;;  %v90_v20 = vld [vmem:[#allocation5 + $0x110] sm:$0xff]  ;;  %v77_v24 = vld [vmem:[#allocation5 + $0xa8] sm:$0xff]  ;;  %1413 = vmatprep.subr.bf16.mxu0 %v1412_v16  ;;  %v1862_v13 = vsub.s32 %v324_v63, %v326_v0 }
  0x3c   :  { %1443 = vmatpush3.bf16.msra.mxu1 %v1442_v12  ;;  %v1444_v21 = vpack.c.bf16 %v107_v19, %v106_v18  ;;  %v91_v22 = vld [vmem:[#allocation5 + $0x118] sm:$0xff]  ;;  %v1416_v26 = vpack.c.bf16 %v77_v24, %v76_v23  ;;  %v60_v27 = vld [vmem:[#allocation5 + $0x20] sm:$0xff]  ;;  %v61_v28 = vld [vmem:[#allocation5 + $0x28] sm:$0xff]  ;;  %p1775_p13 = por %p1774_p12, %p1773_p11 }
  0x3d   :  { %v1446_v25 = vpack.c.bf16 %v91_v22, %v90_v20  ;;  %v108_v29 = vld [vmem:[#allocation5 + $0x1a0] sm:$0xff]  ;;  %v109_v30 = vld [vmem:[#allocation5 + $0x1a8] sm:$0xff]  ;;  %v1418_v33 = vpack.c.bf16 %v61_v28, %v60_v27  ;;  %v78_v35 = vld [vmem:[#allocation5 + $0xb0] sm:$0xff] }
  0x3e   :  { %1445 = vmatprep.subr.bf16.mxu1 %v1444_v21  ;;  %v92_v31 = vld [vmem:[#allocation5 + $0x120] sm:$0xff]  ;;  %v93_v32 = vld [vmem:[#allocation5 + $0x128] sm:$0xff]  ;;  %1415 = vmatpush3.bf16.msra.mxu0 %v1414_v17  ;;  %v1448_v34 = vpack.c.bf16 %v109_v30, %v108_v29  ;;  %v79_v36 = vld [vmem:[#allocation5 + $0xb8] sm:$0xff]  ;;  %p1776_p0 = pnand %p1775_p13, %p1769_p10 }
  0x3f   :  { %v62_v37 = vld [vmem:[#allocation5 + $0x30] sm:$0xff]  ;;  %1417 = vmatprep.subr.bf16.mxu0 %v1416_v26  ;;  %v1450_v38 = vpack.c.bf16 %v93_v32, %v92_v31  ;;  %v1420_v39 = vpack.c.bf16 %v79_v36, %v78_v35  ;;  %v63_v40 = vld [vmem:[#allocation5 + $0x38] sm:$0xff]  ;;  %v80_v46 = vld [vmem:[#allocation5 + $0xc0] sm:$0xff] }
  0x40   :  { %1447 = vmatpush3.bf16.msra.mxu1 %v1446_v25  ;;  %v110_v41 = vld [vmem:[#allocation5 + $0x1b0] sm:$0xff]  ;;  %v111_v42 = vld [vmem:[#allocation5 + $0x1b8] sm:$0xff]  ;;  %v81_v50 = vld [vmem:[#allocation5 + $0xc8] sm:$0xff]  ;;  %v1422_v51 = vpack.c.bf16 %v63_v40, %v62_v37 }
  0x41   :  { %1449 = vmatprep.subr.bf16.mxu1 %v1448_v34  ;;  %v1452_v43 = vpack.c.bf16 %v111_v42, %v110_v41  ;;  %v94_v44 = vld [vmem:[#allocation5 + $0x130] sm:$0xff]  ;;  %v95_v45 = vld [vmem:[#allocation5 + $0x138] sm:$0xff]  ;;  %v112_v52 = vld [vmem:[#allocation5 + $0x1c0] sm:$0xff]  ;;  %v1424_v55 = vpack.c.bf16 %v81_v50, %v80_v46 }
  0x42   :  { %1419 = vmatpush3.bf16.msra.mxu0 %v1418_v33  ;;  %v113_v53 = vld [vmem:[#allocation5 + $0x1c8] sm:$0xff]  ;;  %v1454_v54 = vpack.c.bf16 %v95_v45, %v94_v44  ;;  %v64_v56 = vld [vmem:[#allocation5 + $0x40] sm:$0xff]  ;;  %v82_v61 = vld [vmem:[#allocation5 + $0xd0] sm:$0xff] }
  0x43   :  { %1421 = vmatprep.subr.bf16.mxu0 %v1420_v39  ;;  %v65_v57 = vld [vmem:[#allocation5 + $0x48] sm:$0xff]  ;;  %v96_v58 = vld [vmem:[#allocation5 + $0x140] sm:$0xff]  ;;  %v1456_v59 = vpack.c.bf16 %v113_v53, %v112_v52  ;;  %v83_v62 = vld [vmem:[#allocation5 + $0xd8] sm:$0xff] }
  0x44   :  { %1451 = vmatpush3.bf16.msra.mxu1 %v1450_v38  ;;  %v97_v60 = vld [vmem:[#allocation5 + $0x148] sm:$0xff]  ;;  %v114_v1 = vld [vmem:[#allocation5 + $0x1d0] sm:$0xff]  ;;  %v115_v2 = vld [vmem:[#allocation5 + $0x1d8] sm:$0xff]  ;;  %v1426_v3 = vpack.c.bf16 %v65_v57, %v64_v56  ;;  %v1428_v5 = vpack.c.bf16 %v83_v62, %v82_v61 }
  0x45   :  { %1453 = vmatprep.subr.bf16.mxu1 %v1452_v43  ;;  %v1458_v4 = vpack.c.bf16 %v97_v60, %v96_v58  ;;  %v66_v6 = vld [vmem:[#allocation5 + $0x50] sm:$0xff]  ;;  %v67_v7 = vld [vmem:[#allocation5 + $0x58] sm:$0xff]  ;;  %v1460_v9 = vpack.c.bf16 %v115_v2, %v114_v1  ;;  %v84_v11 = vld [vmem:[#allocation5 + $0xe0] sm:$0xff] }
  0x46   :  { %1423 = vmatpush3.bf16.msra.mxu0 %v1422_v51  ;;  %v98_v8 = vld [vmem:[#allocation5 + $0x150] sm:$0xff]  ;;  %v99_v10 = vld [vmem:[#allocation5 + $0x158] sm:$0xff]  ;;  %v85_v12 = vld [vmem:[#allocation5 + $0xe8] sm:$0xff]  ;;  %v1430_v16 = vpack.c.bf16 %v67_v7, %v66_v6 }
  0x47   :  { %1425 = vmatprep.subr.bf16.mxu0 %v1424_v55  ;;  %v116_v14 = vld [vmem:[#allocation5 + $0x1e0] sm:$0xff]  ;;  %v117_v15 = vld [vmem:[#allocation5 + $0x1e8] sm:$0xff]  ;;  %v1462_v18 = vpack.c.bf16 %v99_v10, %v98_v8  ;;  %v1432_v19 = vpack.c.bf16 %v85_v12, %v84_v11  ;;  %v86_v25 = vld [vmem:[#allocation5 + $0xf0] sm:$0xff] }
  0x48   :  { %1455 = vmatpush3.bf16.msra.mxu1 %v1454_v54  ;;  %v68_v17 = vld [vmem:[#allocation5 + $0x60] sm:$0xff]  ;;  %v69_v20 = vld [vmem:[#allocation5 + $0x68] sm:$0xff]  ;;  %v1464_v23 = vpack.c.bf16 %v117_v15, %v116_v14  ;;  %v87_v26 = vld [vmem:[#allocation5 + $0xf8] sm:$0xff] }
  0x49   :  { %1457 = vmatprep.subr.bf16.mxu1 %v1456_v59  ;;  %v100_v21 = vld [vmem:[#allocation5 + $0x160] sm:$0xff]  ;;  %v101_v24 = vld [vmem:[#allocation5 + $0x168] sm:$0xff]  ;;  %v118_v29 = vld [vmem:[#allocation5 + $0x1f0] sm:$0xff]  ;;  %v1434_v31 = vpack.c.bf16 %v69_v20, %v68_v17  ;;  %v1436_v35 = vpack.c.bf16 %v87_v26, %v86_v25 }
  0x4a   :  { %1427 = vmatpush3.bf16.msra.mxu0 %v1426_v3  ;;  %v52_v22 = vld [vmem:[#allocation2] sm:$0xff]  ;;  %v119_v30 = vld [vmem:[#allocation5 + $0x1f8] sm:$0xff]  ;;  %v1466_v34 = vpack.c.bf16 %v101_v24, %v100_v21  ;;  %v70_v36 = vld [vmem:[#allocation5 + $0x70] sm:$0xff] }
  0x4b   :  { %1429 = vmatprep.subr.bf16.mxu0 %v1428_v5  ;;  %v328_v27 = vrot.slane %v52_v22, %v1862_v13  ;;  %v321_v28 = vcombine.high %v52_v22, %v52_v22  ;;  %v71_v37 = vld [vmem:[#allocation5 + $0x78] sm:$0xff]  ;;  %v102_v38 = vld [vmem:[#allocation5 + $0x170] sm:$0xff]  ;;  %v1468_v39 = vpack.c.bf16 %v119_v30, %v118_v29  ;;  %v136_v41 = vld [vmem:[#allocation5 + $0x280] sm:$0xff] }
  0x4c   :  { %1459 = vmatpush3.bf16.msra.mxu1 %v1458_v4  ;;  %v103_v40 = vld [vmem:[#allocation5 + $0x178] sm:$0xff]  ;;  %v137_v42 = vld [vmem:[#allocation5 + $0x288] sm:$0xff]  ;;  %v168_v44 = vld [vmem:[#allocation5 + $0x380] sm:$0xff]  ;;  %v1438_v46 = vpack.c.bf16 %v71_v37, %v70_v36 }
  0x4d   :  { %1461 = vmatprep.subr.bf16.mxu1 %v1460_v9  ;;  %v336_v32 = vcombine.high %v328_v27, %v328_v27  ;;  %v335_v33 = vrot.slane %v321_v28, %v1862_v13  ;;  %v169_v45 = vld [vmem:[#allocation5 + $0x388] sm:$0xff]  ;;  %v1470_v47 = vpack.c.bf16 %v103_v40, %v102_v38  ;;  %v1472_v48 = vpack.c.bf16 %v137_v42, %v136_v41  ;;  %v120_v49 = vld [vmem:[#allocation5 + $0x200] sm:$0xff]  ;;  %v138_v54 = vld [vmem:[#allocation5 + $0x290] sm:$0xff] }
  0x4e   :  { %1431 = vmatpush3.bf16.msra.mxu0 %v1430_v16  ;;  %v121_v50 = vld [vmem:[#allocation5 + $0x208] sm:$0xff]  ;;  %v152_v51 = vld [vmem:[#allocation5 + $0x300] sm:$0xff]  ;;  %v1504_v52 = vpack.c.bf16 %v169_v45, %v168_v44  ;;  %v139_v55 = vld [vmem:[#allocation5 + $0x298] sm:$0xff] }
  0x4f   :  { %1433 = vmatprep.subr.bf16.mxu0 %v1432_v19  ;;  %469 = vmatprep.mubr.f32.mxu0 %v336_v32  ;;  %v337_v43 = vcombine.high %v335_v33, %v335_v33  ;;  %v153_v53 = vld [vmem:[#allocation5 + $0x308] sm:$0xff]  ;;  %v170_v56 = vld [vmem:[#allocation5 + $0x390] sm:$0xff]  ;;  %v171_v57 = vld [vmem:[#allocation5 + $0x398] sm:$0xff]  ;;  %v1474_v58 = vpack.c.bf16 %v121_v50, %v120_v49  ;;  %v1476_v60 = vpack.c.bf16 %v139_v55, %v138_v54 }
  0x50   :  { %1463 = vmatpush3.bf16.msra.mxu1 %v1462_v18  ;;  %v1506_v59 = vpack.c.bf16 %v153_v53, %v152_v51  ;;  %v122_v61 = vld [vmem:[#allocation5 + $0x210] sm:$0xff]  ;;  %v123_v62 = vld [vmem:[#allocation5 + $0x218] sm:$0xff]  ;;  %v1508_v0 = vpack.c.bf16 %v171_v57, %v170_v56  ;;  %v140_v2 = vld [vmem:[#allocation5 + $0x2a0] sm:$0xff] }
  0x51   :  { %1465 = vmatprep.subr.bf16.mxu1 %v1464_v23  ;;  %539 = vmatprep.mubr.f32.mxu1 %v337_v43  ;;  %v154_v63 = vld [vmem:[#allocation5 + $0x310] sm:$0xff]  ;;  %v155_v1 = vld [vmem:[#allocation5 + $0x318] sm:$0xff]  ;;  %v141_v3 = vld [vmem:[#allocation5 + $0x2a8] sm:$0xff]  ;;  %v1478_v6 = vpack.c.bf16 %v123_v62, %v122_v61 }
  0x52   :  { %1435 = vmatpush3.bf16.msra.mxu0 %v1434_v31  ;;  %v172_v4 = vld [vmem:[#allocation5 + $0x3a0] sm:$0xff]  ;;  %v173_v5 = vld [vmem:[#allocation5 + $0x3a8] sm:$0xff]  ;;  %v1510_v7 = vpack.c.bf16 %v155_v1, %v154_v63  ;;  %v1480_v8 = vpack.c.bf16 %v141_v3, %v140_v2  ;;  %v142_v15 = vld [vmem:[#allocation5 + $0x2b0] sm:$0xff] }
  0x53   :  { %1437 = vmatprep.subr.bf16.mxu0 %v1436_v35  ;;  %v124_v9 = vld [vmem:[#allocation5 + $0x220] sm:$0xff]  ;;  %v125_v10 = vld [vmem:[#allocation5 + $0x228] sm:$0xff]  ;;  %v1512_v12 = vpack.c.bf16 %v173_v5, %v172_v4  ;;  %v143_v16 = vld [vmem:[#allocation5 + $0x2b8] sm:$0xff] }
  0x54   :  { %1467 = vmatpush3.bf16.msra.mxu1 %v1466_v34  ;;  %v156_v11 = vld [vmem:[#allocation5 + $0x320] sm:$0xff]  ;;  %v157_v14 = vld [vmem:[#allocation5 + $0x328] sm:$0xff]  ;;  %v174_v17 = vld [vmem:[#allocation5 + $0x3b0] sm:$0xff]  ;;  %v1482_v19 = vpack.c.bf16 %v125_v10, %v124_v9  ;;  %v1484_v21 = vpack.c.bf16 %v143_v16, %v142_v15 }
  0x55   :  { %1469 = vmatprep.subr.bf16.mxu1 %v1468_v39  ;;  %v175_v18 = vld [vmem:[#allocation5 + $0x3b8] sm:$0xff]  ;;  %v1514_v20 = vpack.c.bf16 %v157_v14, %v156_v11  ;;  %v126_v22 = vld [vmem:[#allocation5 + $0x230] sm:$0xff]  ;;  %v145_v28 = vld [vmem:[#allocation5 + $0x2c8] sm:$0xff] }
  0x56   :  { %1439 = vmatpush3.bf16.msra.mxu0 %v1438_v46  ;;  %v127_v23 = vld [vmem:[#allocation5 + $0x238] sm:$0xff]  ;;  %v158_v24 = vld [vmem:[#allocation5 + $0x330] sm:$0xff]  ;;  %v1516_v25 = vpack.c.bf16 %v175_v18, %v174_v17  ;;  %v176_v29 = vld [vmem:[#allocation5 + $0x3c0] sm:$0xff] }
  0x57   :  { %1473 = vmatprep.subr.bf16.mxu0 %v1472_v48  ;;  %v159_v26 = vld [vmem:[#allocation5 + $0x338] sm:$0xff]  ;;  %v177_v30 = vld [vmem:[#allocation5 + $0x3c8] sm:$0xff]  ;;  %v1486_v32 = vpack.c.bf16 %v127_v23, %v126_v22  ;;  %v128_v37 = vld [vmem:[#allocation5 + $0x240] sm:$0xff] }
  0x58   :  { %1471 = vmatpush3.bf16.msra.mxu1 %v1470_v47  ;;  %v53_v31 = vld [vmem:[#allocation2 + $0x8] sm:$0xff]  ;;  %v1518_v35 = vpack.c.bf16 %v159_v26, %v158_v24  ;;  %v160_v39 = vld [vmem:[#allocation5 + $0x340] sm:$0xff]  ;;  %v1520_v40 = vpack.c.bf16 %v177_v30, %v176_v29  ;;  %v146_v42 = vld [vmem:[#allocation5 + $0x2d0] sm:$0xff] }
  0x59   :  { %1505 = vmatprep.subr.bf16.mxu1 %v1504_v52  ;;  %470 = vmatmul.mubr.f32.vlgmr.msra.gmra.mrb[0].mxu0 %v328_v27  ;;  %v144_v27 = vld [vmem:[#allocation5 + $0x2c0] sm:$0xff]  ;;  %v338_v34 = vcombine.high %v53_v31, %v53_v31  ;;  %v129_v38 = vld [vmem:[#allocation5 + $0x248] sm:$0xff]  ;;  %v147_v43 = vld [vmem:[#allocation5 + $0x2d8] sm:$0xff] }
  0x5a   :  { %1475 = vmatpush3.bf16.msra.mxu0 %v1474_v58  ;;  %v1488_v36 = vpack.c.bf16 %v145_v28, %v144_v27  ;;  %v161_v41 = vld [vmem:[#allocation5 + $0x348] sm:$0xff]  ;;  %v178_v46 = vld [vmem:[#allocation5 + $0x3d0] sm:$0xff]  ;;  %v179_v47 = vld [vmem:[#allocation5 + $0x3d8] sm:$0xff]  ;;  %v1490_v48 = vpack.c.bf16 %v129_v38, %v128_v37  ;;  %v1492_v51 = vpack.c.bf16 %v147_v43, %v146_v42 }
  0x5b   :  { %540 = vmatmul.mubr.f32.vlgmr.msra.gmra.mrb[0].mxu1 %v335_v33  ;;  %1477 = vmatprep.subr.bf16.mxu0 %v1476_v60  ;;  %v1867_v33 = vrot.slane %v53_v31, %v1862_v13  ;;  %v1872_v45 = vrot.slane %v338_v34, %v1862_v13  ;;  %v1522_v50 = vpack.c.bf16 %v161_v41, %v160_v39  ;;  %v130_v52 = vld [vmem:[#allocation5 + $0x250] sm:$0xff]  ;;  %v131_v53 = vld [vmem:[#allocation5 + $0x258] sm:$0xff]  ;;  %v148_v57 = vld [vmem:[#allocation5 + $0x2e0] sm:$0xff] }
  0x5c   :  { %1507 = vmatpush3.bf16.msra.mxu1 %v1506_v59  ;;  %v162_v54 = vld [vmem:[#allocation5 + $0x350] sm:$0xff]  ;;  %v1524_v55 = vpack.c.bf16 %v179_v47, %v178_v46  ;;  %v163_v56 = vld [vmem:[#allocation5 + $0x358] sm:$0xff]  ;;  %v149_v58 = vld [vmem:[#allocation5 + $0x2e8] sm:$0xff]  ;;  %v1494_v61 = vpack.c.bf16 %v131_v53, %v130_v52 }
  0x5d   :  { %1509 = vmatprep.subr.bf16.mxu1 %v1508_v0  ;;  %v353_v44 = vcombine.high %v1867_v33, %v1867_v33  ;;  %v354_v49 = vcombine.high %v1872_v45, %v1872_v45  ;;  %v180_v59 = vld [vmem:[#allocation5 + $0x3e0] sm:$0xff]  ;;  %v181_v60 = vld [vmem:[#allocation5 + $0x3e8] sm:$0xff]  ;;  %v1526_v62 = vpack.c.bf16 %v163_v56, %v162_v54  ;;  %v1496_v63 = vpack.c.bf16 %v149_v58, %v148_v57  ;;  %v150_v5 = vld [vmem:[#allocation5 + $0x2f0] sm:$0xff] }
  0x5e   :  { %1479 = vmatpush3.bf16.msra.mxu0 %v1478_v6  ;;  %v132_v0 = vld [vmem:[#allocation5 + $0x260] sm:$0xff]  ;;  %v133_v1 = vld [vmem:[#allocation5 + $0x268] sm:$0xff]  ;;  %v1528_v3 = vpack.c.bf16 %v181_v60, %v180_v59  ;;  %v151_v6 = vld [vmem:[#allocation5 + $0x2f8] sm:$0xff] }
  0x5f   :  { %1481 = vmatprep.subr.bf16.mxu0 %v1480_v8  ;;  %609 = vmatprep.mubr.f32.mxu0 %v353_v44  ;;  %v164_v2 = vld [vmem:[#allocation5 + $0x360] sm:$0xff]  ;;  %v165_v4 = vld [vmem:[#allocation5 + $0x368] sm:$0xff]  ;;  %v183_v8 = vld [vmem:[#allocation5 + $0x3f8] sm:$0xff]  ;;  %v1498_v9 = vpack.c.bf16 %v133_v1, %v132_v0  ;;  %v1500_v11 = vpack.c.bf16 %v151_v6, %v150_v5 }
  0x60   :  { %1511 = vmatpush3.bf16.msra.mxu1 %v1510_v7  ;;  %679 = vmatprep.mubr.f32.mxu1 %v354_v49  ;;  %v182_v7 = vld [vmem:[#allocation5 + $0x3f0] sm:$0xff]  ;;  %v1530_v10 = vpack.c.bf16 %v165_v4, %v164_v2  ;;  %v135_v14 = vld [vmem:[#allocation5 + $0x278] sm:$0xff]  ;;  %v200_v18 = vld [vmem:[#allocation5 + $0x480] sm:$0xff] }
  0x61   :  { %1513 = vmatprep.subr.bf16.mxu1 %v1512_v12  ;;  %v134_v12 = vld [vmem:[#allocation5 + $0x270] sm:$0xff]  ;;  %v1532_v16 = vpack.c.bf16 %v183_v8, %v182_v7  ;;  %v167_v17 = vld [vmem:[#allocation5 + $0x378] sm:$0xff]  ;;  %v184_v23 = vld [vmem:[#allocation5 + $0x400] sm:$0xff] }
  0x62   :  { %1483 = vmatpush3.bf16.msra.mxu0 %v1482_v19  ;;  %v166_v15 = vld [vmem:[#allocation5 + $0x370] sm:$0xff]  ;;  %v201_v19 = vld [vmem:[#allocation5 + $0x488] sm:$0xff]  ;;  %v1502_v22 = vpack.c.bf16 %v135_v14, %v134_v12  ;;  %v216_v27 = vld [vmem:[#allocation5 + $0x500] sm:$0xff] }
  0x63   :  { %1485 = vmatprep.subr.bf16.mxu0 %v1484_v21  ;;  %v233_v21 = vld [vmem:[#allocation5 + $0x588] sm:$0xff]  ;;  %v1534_v24 = vpack.c.bf16 %v167_v17, %v166_v15  ;;  %v202_v30 = vld [vmem:[#allocation5 + $0x490] sm:$0xff]  ;;  %v203_v31 = vld [vmem:[#allocation5 + $0x498] sm:$0xff] }
  0x64   :  { %1515 = vmatpush3.bf16.msra.mxu1 %v1514_v20  ;;  %v232_v20 = vld [vmem:[#allocation5 + $0x580] sm:$0xff]  ;;  %v185_v26 = vld [vmem:[#allocation5 + $0x408] sm:$0xff]  ;;  %v235_v34 = vld [vmem:[#allocation5 + $0x598] sm:$0xff]  ;;  %v1540_v38 = vpack.c.bf16 %v203_v31, %v202_v30 }
  0x65   :  { %1517 = vmatprep.subr.bf16.mxu1 %v1516_v25  ;;  %v1536_v25 = vpack.c.bf16 %v201_v19, %v200_v18  ;;  %v217_v28 = vld [vmem:[#allocation5 + $0x508] sm:$0xff]  ;;  %v1568_v29 = vpack.c.bf16 %v233_v21, %v232_v20  ;;  %v54_v37 = vld [vmem:[#allocation2 + $0x10] sm:$0xff]  ;;  %v219_v46 = vld [vmem:[#allocation5 + $0x518] sm:$0xff] }
  0x66   :  { %1487 = vmatpush3.bf16.msra.mxu0 %v1486_v32  ;;  %v234_v32 = vld [vmem:[#allocation5 + $0x590] sm:$0xff]  ;;  %v1877_v42 = vrot.slane %v54_v37, %v1862_v13  ;;  %v355_v43 = vcombine.high %v54_v37, %v54_v37  ;;  %v204_v47 = vld [vmem:[#allocation5 + $0x4a0] sm:$0xff]  ;;  %v189_v57 = vld [vmem:[#allocation5 + $0x428] sm:$0xff] }
  0x67   :  { %1489 = vmatprep.subr.bf16.mxu0 %v1488_v36  ;;  %v1570_v36 = vpack.c.bf16 %v217_v28, %v216_v27  ;;  %v186_v39 = vld [vmem:[#allocation5 + $0x410] sm:$0xff]  ;;  %v1572_v44 = vpack.c.bf16 %v235_v34, %v234_v32  ;;  %v236_v49 = vld [vmem:[#allocation5 + $0x5a0] sm:$0xff]  ;;  %v221_v60 = vld [vmem:[#allocation5 + $0x528] sm:$0xff] }
  0x68   :  { %1519 = vmatpush3.bf16.msra.mxu1 %v1518_v35  ;;  %v1538_v35 = vpack.c.bf16 %v185_v26, %v184_v23  ;;  %v218_v41 = vld [vmem:[#allocation5 + $0x510] sm:$0xff]  ;;  %v1883_v52 = vrot.slane %v355_v43, %v1862_v13  ;;  %v188_v56 = vld [vmem:[#allocation5 + $0x420] sm:$0xff]  ;;  %v239_v0 = vld [vmem:[#allocation5 + $0x5b8] sm:$0xff] }
  0x69   :  { %1521 = vmatprep.subr.bf16.mxu1 %v1520_v40  ;;  %v187_v40 = vld [vmem:[#allocation5 + $0x418] sm:$0xff]  ;;  %v1574_v54 = vpack.c.bf16 %v219_v46, %v218_v41  ;;  %v220_v58 = vld [vmem:[#allocation5 + $0x520] sm:$0xff]  ;;  %v222_v5 = vld [vmem:[#allocation5 + $0x530] sm:$0xff] }
  0x6a   :  { %1491 = vmatpush3.bf16.msra.mxu0 %v1490_v48  ;;  %v205_v48 = vld [vmem:[#allocation5 + $0x4a8] sm:$0xff]  ;;  %v1542_v53 = vpack.c.bf16 %v187_v40, %v186_v39  ;;  %v1578_v1 = vpack.c.bf16 %v221_v60, %v220_v58  ;;  %v191_v4 = vld [vmem:[#allocation5 + $0x438] sm:$0xff]  ;;  %v208_v8 = vld [vmem:[#allocation5 + $0x4c0] sm:$0xff] }
  0x6b   :  { %1493 = vmatprep.subr.bf16.mxu0 %v1492_v51  ;;  %v370_v51 = vcombine.high %v1877_v42, %v1877_v42  ;;  %v223_v7 = vld [vmem:[#allocation5 + $0x538] sm:$0xff]  ;;  %v193_v17 = vld [vmem:[#allocation5 + $0x448] sm:$0xff]  ;;  %v224_v18 = vld [vmem:[#allocation5 + $0x540] sm:$0xff] }
  0x6c   :  { %1523 = vmatpush3.bf16.msra.mxu1 %v1522_v50  ;;  %v237_v50 = vld [vmem:[#allocation5 + $0x5a8] sm:$0xff]  ;;  %v1582_v14 = vpack.c.bf16 %v223_v7, %v222_v5  ;;  %v210_v21 = vld [vmem:[#allocation5 + $0x4d0] sm:$0xff]  ;;  %v227_v32 = vld [vmem:[#allocation5 + $0x558] sm:$0xff] }
  0x6d   :  { %1525 = vmatprep.subr.bf16.mxu1 %v1524_v55  ;;  %v1544_v55 = vpack.c.bf16 %v205_v48, %v204_v47  ;;  %v1576_v59 = vpack.c.bf16 %v237_v50, %v236_v49  ;;  %v225_v20 = vld [vmem:[#allocation5 + $0x548] sm:$0xff]  ;;  %v242_v23 = vld [vmem:[#allocation5 + $0x5d0] sm:$0xff]  ;;  %v212_v34 = vld [vmem:[#allocation5 + $0x4e0] sm:$0xff] }
  0x6e   :  { %1495 = vmatpush3.bf16.msra.mxu0 %v1494_v61  ;;  %v206_v61 = vld [vmem:[#allocation5 + $0x4b0] sm:$0xff]  ;;  %v1586_v26 = vpack.c.bf16 %v225_v20, %v224_v18  ;;  %v245_v37 = vld [vmem:[#allocation5 + $0x5e8] sm:$0xff]  ;;  %v196_v41 = vld [vmem:[#allocation5 + $0x460] sm:$0xff] }
  0x6f   :  { %1497 = vmatprep.subr.bf16.mxu0 %v1496_v63  ;;  %v238_v63 = vld [vmem:[#allocation5 + $0x5b0] sm:$0xff]  ;;  %v197_v43 = vld [vmem:[#allocation5 + $0x468] sm:$0xff]  ;;  %v215_v49 = vld [vmem:[#allocation5 + $0x4f8] sm:$0xff] }
  0x70   :  { %1527 = vmatpush3.bf16.msra.mxu1 %v1526_v62  ;;  %v207_v62 = vld [vmem:[#allocation5 + $0x4b8] sm:$0xff]  ;;  %v1580_v6 = vpack.c.bf16 %v239_v0, %v238_v63  ;;  %v194_v28 = vld [vmem:[#allocation5 + $0x450] sm:$0xff]  ;;  %v229_v47 = vld [vmem:[#allocation5 + $0x568] sm:$0xff] }
  0x71   :  { %1529 = vmatprep.subr.bf16.mxu1 %v1528_v3  ;;  %v1548_v2 = vpack.c.bf16 %v207_v62, %v206_v61  ;;  %v190_v3 = vld [vmem:[#allocation5 + $0x430] sm:$0xff]  ;;  %v199_v58 = vld [vmem:[#allocation5 + $0x478] sm:$0xff]  ;;  %v264_v61 = vld [vmem:[#allocation5 + $0x680] sm:$0xff] }
  0x72   :  { %1499 = vmatpush3.bf16.msra.mxu0 %v1498_v9  ;;  %v209_v9 = vld [vmem:[#allocation5 + $0x4c8] sm:$0xff]  ;;  %v1550_v12 = vpack.c.bf16 %v191_v4, %v190_v3  ;;  %v226_v30 = vld [vmem:[#allocation5 + $0x550] sm:$0xff]  ;;  %v231_v60 = vld [vmem:[#allocation5 + $0x578] sm:$0xff] }
  0x73   :  { %1501 = vmatprep.subr.bf16.mxu0 %v1500_v11  ;;  %v241_v11 = vld [vmem:[#allocation5 + $0x5c8] sm:$0xff]  ;;  %v1552_v15 = vpack.c.bf16 %v209_v9, %v208_v8  ;;  %v1590_v39 = vpack.c.bf16 %v227_v32, %v226_v30  ;;  %v214_v48 = vld [vmem:[#allocation5 + $0x4f0] sm:$0xff]  ;;  %v296_v63 = vld [vmem:[#allocation5 + $0x780] sm:$0xff] }
  0x74   :  { %1531 = vmatpush3.bf16.msra.mxu1 %v1530_v10  ;;  %v240_v10 = vld [vmem:[#allocation5 + $0x5c0] sm:$0xff]  ;;  %v246_v50 = vld [vmem:[#allocation5 + $0x5f0] sm:$0xff]  ;;  %v265_v62 = vld [vmem:[#allocation5 + $0x688] sm:$0xff] }
  0x75   :  { %1533 = vmatprep.subr.bf16.mxu1 %v1532_v16  ;;  %v192_v16 = vld [vmem:[#allocation5 + $0x440] sm:$0xff]  ;;  %v1584_v19 = vpack.c.bf16 %v241_v11, %v240_v10  ;;  %v297_v0 = vld [vmem:[#allocation5 + $0x788] sm:$0xff]  ;;  %v1600_v3 = vpack.c.bf16 %v265_v62, %v264_v61  ;;  %v266_v9 = vld [vmem:[#allocation5 + $0x690] sm:$0xff] }
  0x76   :  { %1503 = vmatpush3.bf16.msra.mxu0 %v1502_v22  ;;  %v211_v22 = vld [vmem:[#allocation5 + $0x4d8] sm:$0xff]  ;;  %v248_v4 = vld [vmem:[#allocation5 + $0x600] sm:$0xff]  ;;  %v249_v5 = vld [vmem:[#allocation5 + $0x608] sm:$0xff]  ;;  %v1632_v7 = vpack.c.bf16 %v297_v0, %v296_v63 }
  0x77   :  { %1537 = vmatprep.subr.bf16.mxu0 %v1536_v25  ;;  %v1554_v25 = vpack.c.bf16 %v193_v17, %v192_v16  ;;  %v1556_v27 = vpack.c.bf16 %v211_v22, %v210_v21  ;;  %v281_v8 = vld [vmem:[#allocation5 + $0x708] sm:$0xff]  ;;  %v267_v10 = vld [vmem:[#allocation5 + $0x698] sm:$0xff]  ;;  %v1602_v16 = vpack.c.bf16 %v249_v5, %v248_v4  ;;  %v282_v21 = vld [vmem:[#allocation5 + $0x710] sm:$0xff] }
  0x78   :  { %1535 = vmatpush3.bf16.msra.mxu1 %v1534_v24  ;;  %v243_v24 = vld [vmem:[#allocation5 + $0x5d8] sm:$0xff]  ;;  %v1604_v18 = vpack.c.bf16 %v267_v10, %v266_v9  ;;  %v252_v32 = vld [vmem:[#allocation5 + $0x620] sm:$0xff]  ;;  %v289_v61 = vld [vmem:[#allocation5 + $0x748] sm:$0xff] }
  0x79   :  { %1569 = vmatprep.subr.bf16.mxu1 %v1568_v29  ;;  %610 = vmatmul.mubr.f32.vlgmr.msra.gmra.mrb[2].mxu0 %v1867_v33  ;;  %v371_v33 = vcombine.high %v1883_v52, %v1883_v52  ;;  %v195_v29 = vld [vmem:[#allocation5 + $0x458] sm:$0xff]  ;;  %v1588_v31 = vpack.c.bf16 %v243_v24, %v242_v23  ;;  %v268_v24 = vld [vmem:[#allocation5 + $0x6a0] sm:$0xff]  ;;  %v274_v62 = vld [vmem:[#allocation5 + $0x6d0] sm:$0xff] }
  0x7a   :  { %1539 = vmatpush3.bf16.msra.mxu0 %v1538_v35  ;;  %749 = vmatprep.mubr.f32.mxu0 %v370_v51  ;;  %v213_v35 = vld [vmem:[#allocation5 + $0x4e8] sm:$0xff]  ;;  %v247_v51 = vld [vmem:[#allocation5 + $0x5f8] sm:$0xff]  ;;  %v306_v0 = vld [vmem:[#allocation5 + $0x7d0] sm:$0xff] }
  0x7b   :  { %680 = vmatmul.mubr.f32.vlgmr.msra.gmra.mrb[2].mxu1 %v1872_v45  ;;  %1541 = vmatprep.subr.bf16.mxu0 %v1540_v38  ;;  %v1546_v45 = vpack.c.bf16 %v189_v57, %v188_v56  ;;  %v1558_v38 = vpack.c.bf16 %v195_v29, %v194_v28  ;;  %v1560_v40 = vpack.c.bf16 %v213_v35, %v212_v34  ;;  %v198_v57 = vld [vmem:[#allocation5 + $0x470] sm:$0xff]  ;;  %v251_v20 = vld [vmem:[#allocation5 + $0x618] sm:$0xff]  ;;  %v253_v34 = vld [vmem:[#allocation5 + $0x628] sm:$0xff] }
  0x7c   :  { %1571 = vmatpush3.bf16.msra.mxu1 %v1570_v36  ;;  %819 = vmatprep.mubr.f32.mxu1 %v371_v33  ;;  %v244_v36 = vld [vmem:[#allocation5 + $0x5e0] sm:$0xff]  ;;  %v1564_v56 = vpack.c.bf16 %v215_v49, %v214_v48  ;;  %v230_v33 = vld [vmem:[#allocation5 + $0x570] sm:$0xff]  ;;  %v283_v23 = vld [vmem:[#allocation5 + $0x718] sm:$0xff] }
  0x7d   :  { %1573 = vmatprep.subr.bf16.mxu1 %v1572_v44  ;;  %v228_v44 = vld [vmem:[#allocation5 + $0x560] sm:$0xff]  ;;  %v1592_v46 = vpack.c.bf16 %v245_v37, %v244_v36  ;;  %v1638_v30 = vpack.c.bf16 %v283_v23, %v282_v21  ;;  %v285_v37 = vld [vmem:[#allocation5 + $0x728] sm:$0xff]  ;;  %v287_v49 = vld [vmem:[#allocation5 + $0x738] sm:$0xff] }
  0x7e   :  { %1543 = vmatpush3.bf16.msra.mxu0 %v1542_v53  ;;  %v1562_v53 = vpack.c.bf16 %v197_v43, %v196_v41  ;;  %v284_v35 = vld [vmem:[#allocation5 + $0x720] sm:$0xff]  ;;  %v1610_v41 = vpack.c.bf16 %v253_v34, %v252_v32  ;;  %v275_v63 = vld [vmem:[#allocation5 + $0x6d8] sm:$0xff]  ;;  %v258_v4 = vld [vmem:[#allocation5 + $0x650] sm:$0xff] }
  0x7f   :  { %1545 = vmatprep.subr.bf16.mxu0 %v1544_v55  ;;  %v1594_v55 = vpack.c.bf16 %v229_v47, %v228_v44  ;;  %v254_v44 = vld [vmem:[#allocation5 + $0x630] sm:$0xff]  ;;  %v259_v5 = vld [vmem:[#allocation5 + $0x658] sm:$0xff]  ;;  %v276_v9 = vld [vmem:[#allocation5 + $0x6e0] sm:$0xff] }
  0x80   :  { %1575 = vmatpush3.bf16.msra.mxu1 %v1574_v54  ;;  %v55_v54 = vld [vmem:[#allocation2 + $0x18] sm:$0xff]  ;;  %v286_v47 = vld [vmem:[#allocation5 + $0x730] sm:$0xff]  ;;  %v277_v10 = vld [vmem:[#allocation5 + $0x6e8] sm:$0xff] }
  0x81   :  { %1577 = vmatprep.subr.bf16.mxu1 %v1576_v59  ;;  %v1596_v59 = vpack.c.bf16 %v247_v51, %v246_v50  ;;  %v1889_v11 = vrot.slane %v55_v54, %v1862_v13  ;;  %v272_v50 = vld [vmem:[#allocation5 + $0x6c0] sm:$0xff]  ;;  %v273_v51 = vld [vmem:[#allocation5 + $0x6c8] sm:$0xff]  ;;  %v294_v34 = vld [vmem:[#allocation5 + $0x770] sm:$0xff] }
  0x82   :  { %1547 = vmatpush3.bf16.msra.mxu0 %v1546_v45  ;;  %v372_v45 = vcombine.high %v55_v54, %v55_v54  ;;  %v305_v54 = vld [vmem:[#allocation5 + $0x7c8] sm:$0xff]  ;;  %v292_v21 = vld [vmem:[#allocation5 + $0x760] sm:$0xff] }
  0x83   :  { %1549 = vmatprep.subr.bf16.mxu0 %v1548_v2  ;;  %v1598_v2 = vpack.c.bf16 %v231_v60, %v230_v33  ;;  %v257_v33 = vld [vmem:[#allocation5 + $0x648] sm:$0xff] }
  0x84   :  { %1579 = vmatpush3.bf16.msra.mxu1 %v1578_v1  ;;  %v1566_v1 = vpack.c.bf16 %v199_v58, %v198_v57  ;;  %v1616_v57 = vpack.c.bf16 %v273_v51, %v272_v50  ;;  %v256_v58 = vld [vmem:[#allocation5 + $0x640] sm:$0xff]  ;;  %v293_v23 = vld [vmem:[#allocation5 + $0x768] sm:$0xff] }
  0x85   :  { %1581 = vmatprep.subr.bf16.mxu1 %v1580_v6  ;;  %v280_v6 = vld [vmem:[#allocation5 + $0x700] sm:$0xff]  ;;  %v975_v50 = vld [vmem:[#allocation5 + $0x848] sm:$0xff] }
  0x86   :  { %1551 = vmatpush3.bf16.msra.mxu0 %v1550_v12  ;;  %v298_v12 = vld [vmem:[#allocation5 + $0x790] sm:$0xff]  ;;  %v1634_v17 = vpack.c.bf16 %v281_v8, %v280_v6  ;;  %v291_v8 = vld [vmem:[#allocation5 + $0x758] sm:$0xff] }
  0x87   :  { %1553 = vmatprep.subr.bf16.mxu0 %v1552_v15  ;;  %v1892_v15 = vrot.slane %v372_v45, %v1862_v13  ;;  %v300_v13 = vld [vmem:[#allocation5 + $0x7a0] sm:$0xff]  ;;  %v307_v45 = vld [vmem:[#allocation5 + $0x7d8] sm:$0xff]  ;;  %v290_v6 = vld [vmem:[#allocation5 + $0x750] sm:$0xff] }
  0x88   :  { %1583 = vmatpush3.bf16.msra.mxu1 %v1582_v14  ;;  %v299_v14 = vld [vmem:[#allocation5 + $0x798] sm:$0xff] }
  0x89   :  { %1585 = vmatprep.subr.bf16.mxu1 %v1584_v19  ;;  %v250_v19 = vld [vmem:[#allocation5 + $0x610] sm:$0xff]  ;;  %v1636_v22 = vpack.c.bf16 %v299_v14, %v298_v12  ;;  %v388_v28 = vcombine.high %v1892_v15, %v1892_v15  ;;  %v308_v12 = vld [vmem:[#allocation5 + $0x7e0] sm:$0xff]  ;;  %v309_v14 = vld [vmem:[#allocation5 + $0x7e8] sm:$0xff] }
  0x8a   :  { %1555 = vmatpush3.bf16.msra.mxu0 %v1554_v25  ;;  %v269_v25 = vld [vmem:[#allocation5 + $0x6a8] sm:$0xff]  ;;  %v1606_v29 = vpack.c.bf16 %v251_v20, %v250_v19  ;;  %v260_v19 = vld [vmem:[#allocation5 + $0x660] sm:$0xff] }
  0x8b   :  { %1557 = vmatprep.subr.bf16.mxu0 %v1556_v27  ;;  %v301_v27 = vld [vmem:[#allocation5 + $0x7a8] sm:$0xff] }
  0x8c   :  { %1587 = vmatpush3.bf16.msra.mxu1 %v1586_v26  ;;  %v387_v26 = vcombine.high %v1889_v11, %v1889_v11  ;;  %v1640_v36 = vpack.c.bf16 %v301_v27, %v300_v13  ;;  %v261_v20 = vld [vmem:[#allocation5 + $0x668] sm:$0xff]  ;;  %v311_v13 = vld [vmem:[#allocation5 + $0x7f8] sm:$0xff] }
  0x8d   :  { %1589 = vmatprep.subr.bf16.mxu1 %v1588_v31  ;;  %v1608_v31 = vpack.c.bf16 %v269_v25, %v268_v24  ;;  %v278_v24 = vld [vmem:[#allocation5 + $0x6f0] sm:$0xff]  ;;  %v279_v25 = vld [vmem:[#allocation5 + $0x6f8] sm:$0xff]  ;;  %v1626_v27 = vpack.c.bf16 %v261_v20, %v260_v19 }
  0x8e   :  { %1559 = vmatpush3.bf16.msra.mxu0 %v1558_v38  ;;  %v271_v38 = vld [vmem:[#allocation5 + $0x6b8] sm:$0xff] }
  0x8f   :  { %1561 = vmatprep.subr.bf16.mxu0 %v1560_v40  ;;  %v303_v40 = vld [vmem:[#allocation5 + $0x7b8] sm:$0xff] }
  0x90   :  { %1591 = vmatpush3.bf16.msra.mxu1 %v1590_v39  ;;  %v302_v39 = vld [vmem:[#allocation5 + $0x7b0] sm:$0xff] }
  0x91   :  { %1593 = vmatprep.subr.bf16.mxu1 %v1592_v46  ;;  %v255_v46 = vld [vmem:[#allocation5 + $0x638] sm:$0xff]  ;;  %v1644_v48 = vpack.c.bf16 %v303_v40, %v302_v39  ;;  %v968_v39 = vld [vmem:[#allocation5 + $0x810] sm:$0xff]  ;;  %v1802_v40 = vmov 0.0|0.0  }
  0x92   :  { %1563 = vmatpush3.bf16.msra.mxu0 %v1562_v53  ;;  %v304_v53 = vld [vmem:[#allocation5 + $0x7c0] sm:$0xff] }
  0x93   :  { %1565 = vmatprep.subr.bf16.mxu0 %v1564_v56  ;;  %v1646_v56 = vpack.c.bf16 %v287_v49, %v286_v47  ;;  %v1648_v60 = vpack.c.bf16 %v305_v54, %v304_v53  ;;  %v973_v49 = vld [vmem:[#allocation5 + $0x838] sm:$0xff]  ;;  %v976_v53 = vld [vmem:[#allocation5 + $0x850] sm:$0xff] }
  0x94   :  { %1595 = vmatpush3.bf16.msra.mxu1 %v1594_v55  ;;  %v1614_v55 = vpack.c.bf16 %v255_v46, %v254_v44  ;;  %v970_v44 = vld [vmem:[#allocation5 + $0x820] sm:$0xff]  ;;  %v971_v46 = vld [vmem:[#allocation5 + $0x828] sm:$0xff]  ;;  %v977_v54 = vld [vmem:[#allocation5 + $0x858] sm:$0xff] }
  0x95   :  { %1597 = vmatprep.subr.bf16.mxu1 %v1596_v59  ;;  %v288_v59 = vld [vmem:[#allocation5 + $0x740] sm:$0xff]  ;;  %v1671_v47 = vpack.c.bf16 %v971_v46, %v970_v44 }
  0x96   :  { %1567 = vmatpush3.bf16.msra.mxu0 %v1566_v1  ;;  %v1618_v1 = vpack.c.bf16 %v257_v33, %v256_v58  ;;  %v980_v33 = vld [vmem:[#allocation5 + $0x870] sm:$0xff] }
  0x97   :  { %1601 = vmatprep.subr.bf16.mxu0 %v1600_v3  ;;  %v1620_v3 = vpack.c.bf16 %v275_v63, %v274_v62  ;;  %v1074_v63 = vld [vmem:[#allocation7] ss:$0 sm:$0xff] }
  0x98   :  { %1599 = vmatpush3.bf16.msra.mxu1 %v1598_v2  ;;  %v1650_v2 = vpack.c.bf16 %v289_v61, %v288_v59  ;;  %v981_v59 = vld [vmem:[#allocation5 + $0x878] sm:$0xff]  ;;  %v1804_v61 = vmov 0.0  }
  0x99   :  { %1633 = vmatprep.subr.bf16.mxu1 %v1632_v7  ;;  %750 = vmatmul.mubr.f32.vlgmr.msra.gmra.mrb[4].mxu0 %v1877_v42  ;;  %v270_v42 = vld [vmem:[#allocation5 + $0x6b0] sm:$0xff]  ;;  %v1652_v7 = vpack.c.bf16 %v307_v45, %v306_v0 }
  0x9a   :  { %1603 = vmatpush3.bf16.msra.mxu0 %v1602_v16  ;;  %889 = vmatprep.mubr.f32.mxu0 %v387_v26  ;;  %v1612_v43 = vpack.c.bf16 %v271_v38, %v270_v42  ;;  %v1622_v16 = vpack.c.bf16 %v259_v5, %v258_v4  ;;  %v310_v26 = vld [vmem:[#allocation5 + $0x7f0] sm:$0xff]  ;;  %v966_v42 = vld [vmem:[#allocation5 + $0x800] sm:$0xff]  ;;  %v967_v38 = vld [vmem:[#allocation5 + $0x808] sm:$0xff] }
  0x9b   :  { %820 = vmatmul.mubr.f32.vlgmr.msra.gmra.mrb[4].mxu1 %v1883_v52  ;;  %1605 = vmatprep.subr.bf16.mxu0 %v1604_v18  ;;  %v1642_v52 = vpack.c.bf16 %v285_v37, %v284_v35  ;;  %v1624_v18 = vpack.c.bf16 %v277_v10, %v276_v9  ;;  %v1660_v32 = vpack.c.bf16 %v311_v13, %v310_v26  ;;  %v295_v35 = vld [vmem:[#allocation5 + $0x778] sm:$0xff] }
  0x9c   :  { %1635 = vmatpush3.bf16.msra.mxu1 %v1634_v17  ;;  %959 = vmatprep.mubr.f32.mxu1 %v388_v28  ;;  %v1654_v17 = vpack.c.bf16 %v291_v8, %v290_v6  ;;  %v1658_v28 = vpack.c.bf16 %v293_v23, %v292_v21  ;;  %v1662_v37 = vpack.c.bf16 %v295_v35, %v294_v34  ;;  %v1075_v34 = vld [vmem:[#allocation7 + $0x1] ss:$0 sm:$0xff] }
  0x9d   :  { %1637 = vmatprep.subr.bf16.mxu1 %v1636_v22  ;;  %v1656_v22 = vpack.c.bf16 %v309_v14, %v308_v12 }
  0x9e   :  { %1607 = vmatpush3.bf16.msra.mxu0 %v1606_v29  ;;  %v1628_v29 = vpack.c.bf16 %v279_v25, %v278_v24 }
  0x9f   :  { %1609 = vmatprep.subr.bf16.mxu0 %v1608_v31  ;;  %v263_v31 = vld [vmem:[#allocation5 + $0x678] sm:$0xff] }
  0xa0   :  { %1639 = vmatpush3.bf16.msra.mxu1 %v1638_v30  ;;  %v262_v30 = vld [vmem:[#allocation5 + $0x670] sm:$0xff] }
  0xa1   :  { %1641 = vmatprep.subr.bf16.mxu1 %v1640_v36  ;;  %v1630_v36 = vpack.c.bf16 %v263_v31, %v262_v30 }
  0xa2   :  { %1611 = vmatpush3.bf16.msra.mxu0 %v1610_v41  ;;  %v1665_v41 = vpack.c.bf16 %v967_v38, %v966_v42 }
  0xa3   :  { %1613 = vmatprep.subr.bf16.mxu0 %v1612_v43 }
  0xa4   :  { %1643 = vmatpush3.bf16.msra.mxu1 %v1642_v52  ;;  %v969_v52 = vld [vmem:[#allocation5 + $0x818] sm:$0xff] }
  0xa5   :  { %1645 = vmatprep.subr.bf16.mxu1 %v1644_v48  ;;  %v1668_v43 = vpack.c.bf16 %v969_v52, %v968_v39  ;;  %v972_v48 = vld [vmem:[#allocation5 + $0x830] sm:$0xff] }
  0xa6   :  { %1615 = vmatpush3.bf16.msra.mxu0 %v1614_v55  ;;  %v1680_v55 = vpack.c.bf16 %v977_v54, %v976_v53 }
  0xa7   :  { %1617 = vmatprep.subr.bf16.mxu0 %v1616_v57  ;;  %v979_v57 = vld [vmem:[#allocation5 + $0x868] sm:$0xff] }
  0xa8   :  { %1647 = vmatpush3.bf16.msra.mxu1 %v1646_v56  ;;  %v978_v56 = vld [vmem:[#allocation5 + $0x860] sm:$0xff] }
  0xa9   :  { %1649 = vmatprep.subr.bf16.mxu1 %v1648_v60  ;;  %v1683_v58 = vpack.c.bf16 %v979_v57, %v978_v56  ;;  %v1686_v60 = vpack.c.bf16 %v981_v59, %v980_v33 }
  0xaa   :  { %1619 = vmatpush3.bf16.msra.mxu0 %v1618_v1 }
  0xab   :  { %1621 = vmatprep.subr.bf16.mxu0 %v1620_v3 }
  0xac   :  { %1651 = vmatpush3.bf16.msra.mxu1 %v1650_v2 }
  0xad   :  { %1653 = vmatprep.subr.bf16.mxu1 %v1652_v7 }
  0xae   :  { %1623 = vmatpush3.bf16.msra.mxu0 %v1622_v16 }
  0xaf   :  { %1625 = vmatprep.subr.bf16.mxu0 %v1624_v18 }
  0xb0   :  { %1655 = vmatpush3.bf16.msra.mxu1 %v1654_v17 }
  0xb1   :  { %1657 = vmatprep.subr.bf16.mxu1 %v1656_v22 }
  0xb2   :  { %1627 = vmatpush3.bf16.msra.mxu0 %v1626_v27 }
  0xb3   :  { %1629 = vmatprep.subr.bf16.mxu0 %v1628_v29 }
  0xb4   :  { %1659 = vmatpush3.bf16.msra.mxu1 %v1658_v28 }
  0xb5   :  { %1661 = vmatprep.subr.bf16.mxu1 %v1660_v32 }
  0xb6   :  { %1631 = vmatpush3.bf16.msra.mxu0 %v1630_v36 }
  0xb7   :  { %1664 = vmatprep.subr.bf16.mxu0 %v1802_v40 }
  0xb8   :  { %1663 = vmatpush3.bf16.msra.mxu1 %v1662_v37 }
  0xb9   :  { %890 = vmatmul.mubr.f32.vlgmr.msra.gmra.mrb[6].mxu0 %v1889_v11  ;;  %v1674_v11 = vpack.c.bf16 %v973_v49, %v972_v48 }
  0xba   :  { %1666 = vmatpush3.bf16.msra.mxu0 %v1665_v41  ;;  %1405 = vmatprep.mubr.msk.f32.mxu0 %vm1803_vm0, %v1804_v61 }
  0xbb   :  { %960 = vmatmul.mubr.f32.vlgmr.msra.gmra.mrb[6].mxu1 %v1892_v15  ;;  %1667 = vmatprep.subr.bf16.mxu0 %v1802_v40  ;;  %v974_v15 = vld [vmem:[#allocation5 + $0x840] sm:$0xff] }
  0xbc   :  { %v1677_v51 = vpack.c.bf16 %v975_v50, %v974_v15 }
  0xbe   :  { %1669 = vmatpush3.bf16.msra.mxu0 %v1668_v43 }
  0xbf   :  { %1670 = vmatprep.subr.bf16.mxu0 %v1802_v40 }
  0xc2   :  { %1672 = vmatpush3.bf16.msra.mxu0 %v1671_v47 }
  0xc3   :  { %1673 = vmatprep.subr.bf16.mxu0 %v1802_v40 }
  0xc6   :  { %1675 = vmatpush3.bf16.msra.mxu0 %v1674_v11 }
  0xc7   :  { %1676 = vmatprep.subr.bf16.mxu0 %v1802_v40 }
  0xca   :  { %1678 = vmatpush3.bf16.msra.mxu0 %v1677_v51 }
  0xcb   :  { %1679 = vmatprep.subr.bf16.mxu0 %v1802_v40 }
  0xce   :  { %1681 = vmatpush3.bf16.msra.mxu0 %v1680_v55 }
  0xcf   :  { %1682 = vmatprep.subr.bf16.mxu0 %v1802_v40 }
  0xd2   :  { %1684 = vmatpush3.bf16.msra.mxu0 %v1683_v58 }
  0xd3   :  { %1685 = vmatprep.subr.bf16.mxu0 %v1802_v40 }
  0xd6   :  { %1687 = vmatpush3.bf16.msra.mxu0 %v1686_v60 }
 0x12c   :  { %v1108_v62 = vpop.f32.mrb[0].mxu0 }
 0x12d   :  { %v1109_v0 = vpop.f32.mrb[1].mxu0 }
 0x12e   :  { %v1143_v45 = vpop.f32.mrb[0].mxu1  ;;  %v1110_v1 = vadd.f32 %v1109_v0, %v1108_v62 }
 0x12f   :  { %v1144_v2 = vpop.f32.mrb[1].mxu1 }
 0x130   :  { %v1145_v3 = vadd.f32 %v1144_v2, %v1143_v45  ;;  %v472_v4 = vadd.f32 %v1110_v1, %v1074_v63 }
 0x132   :  { %v542_v5 = vadd.f32 %v1145_v3, %v472_v4 }
 0x14c   :  { %v1178_v6 = vpop.f32.mrb[2].mxu0 }
 0x14d   :  { %v1179_v7 = vpop.f32.mrb[3].mxu0 }
 0x14e   :  { %v1213_v8 = vpop.f32.mrb[2].mxu1  ;;  %v1180_v9 = vadd.f32 %v1179_v7, %v1178_v6 }
 0x14f   :  { %v1214_v10 = vpop.f32.mrb[3].mxu1 }
 0x150   :  { %v1215_v12 = vadd.f32 %v1214_v10, %v1213_v8  ;;  %v612_v14 = vadd.f32 %v1180_v9, %v542_v5 }
 0x152   :  { %v682_v16 = vadd.f32 %v1215_v12, %v612_v14 }
 0x16c   :  { %v1248_v17 = vpop.f32.mrb[4].mxu0 }
 0x16d   :  { %v1249_v18 = vpop.f32.mrb[5].mxu0 }
 0x16e   :  { %v1283_v19 = vpop.f32.mrb[4].mxu1  ;;  %v1250_v20 = vadd.f32 %v1249_v18, %v1248_v17 }
 0x16f   :  { %v1284_v21 = vpop.f32.mrb[5].mxu1 }
 0x170   :  { %v1285_v22 = vadd.f32 %v1284_v21, %v1283_v19  ;;  %v752_v23 = vadd.f32 %v1250_v20, %v682_v16 }
 0x172   :  { %v822_v24 = vadd.f32 %v1285_v22, %v752_v23 }
 0x18c   :  { %v1318_v25 = vpop.f32.mrb[6].mxu0 }
 0x18d   :  { %v1319_v26 = vpop.f32.mrb[7].mxu0 }
 0x18e   :  { %v1353_v13 = vpop.f32.mrb[6].mxu1  ;;  %v1320_v27 = vadd.f32 %v1319_v26, %v1318_v25 }
 0x18f   :  { %v1354_v28 = vpop.f32.mrb[7].mxu1 }
 0x190   :  { %v1355_v29 = vadd.f32 %v1354_v28, %v1353_v13  ;;  %v892_v30 = vadd.f32 %v1320_v27, %v822_v24 }
 0x192   :  { %v962_v31 = vadd.f32 %v1355_v29, %v892_v30 }
 0x194   :  { %v965_v32 = vmax.f32 %v962_v31, 0.0 }
 0x196   :  { %1406 = vmatmul.mubr.f32.vlgmr.msra.gmra.mrb[8].mxu0 %v965_v32 }
 0x269   :  { %v1053_v35 = vpop.f32.mrb[8].mxu0 }
 0x26a   :  { %v1054_v36 = vadd.f32 %v1075_v34, %v1053_v35  ;;  %v1407_v37 = vpop.f32.mrb[9].mxu0 }
 0x26c   :  { %1057 = vst [vmem:[#allocation8] sm:$0x3] %v1054_v36 }
 0x26d   :  { %1779 = shalt.err (!%p1776_p0)
}
 0x26e   :  { %s1780_s25 = scalar_lea.hbm %s1917_s3, 32 }
 0x26f   :  { %p1781_p1 = scmp.ne.s32.totalorder %s1917_s3, %s1780_s25  ;;  %p1784_p2 = scmp.lt.u32.totalorder %s1780_s25, %s1917_s3 }
 0x271   :  { %p1786_p3 = pnand %p1784_p2, %p1781_p1 }
 0x273   :  { %1789 = shalt.err (!%p1786_p3)
}
 0x274   :  { %1067 = dma.vmem_to_hbm [thread:$0]  %s1065_s21, 32, %s1917_s3, [#allocation4]  }
 0x275   :  { %1794 = dma.done.wait [#allocation4], 32  }
 0x276   :  { %1795 = vsyncadd [#allocation4], 4294967264 }
 0x277   :  { %1071 = vsyncpa [#allocation3], 1 }
 0x278   :  { %1072 = vsyncpa [#allocation6], 1 }
 0x279   :  { %1073 = vsyncpa [#allocation4], 1 }

</bundles_post_ra>
